<compile_context>
chip_gen: v6e
topology: v6e:2x2x1
jax: 0.10.0
libtpu: 0.0.40
codegen_flags: <defaults>
</compile_context>

<pallas_src>
import jax
import jax.numpy as jnp
import numpy as np
from jax.experimental import pallas as pl
from jax.experimental.pallas import tpu as pltpu


def _mlp_kernel(x1_ref, x2_ref,
                w1a_ref, w1b_ref, b1_ref,
                w2_ref, b2_ref,
                w3_ref, b3_ref,
                o_ref):
    # layer1 + ReLU:  concat(x1, x2, axis=1) @ W1  ==  x1 @ W1a + x2 @ W1b
    h1 = (jnp.dot(x1_ref[...], w1a_ref[...], preferred_element_type=jnp.float32)
          + jnp.dot(x2_ref[...], w1b_ref[...], preferred_element_type=jnp.float32)
          + b1_ref[...])
    h1 = jnp.maximum(h1, 0.0).astype(w2_ref.dtype)

    # layer2 + ReLU
    h2 = jnp.dot(h1, w2_ref[...], preferred_element_type=jnp.float32) + b2_ref[...]
    h2 = jnp.maximum(h2, 0.0).astype(w3_ref.dtype)

    # layer3 (no activation); output columns are zero-padded to lane-dense width.
    out = jnp.dot(h2, w3_ref[...], preferred_element_type=jnp.float32) + b3_ref[...]
    o_ref[...] = out.astype(o_ref.dtype)


def _round_up(x, m):
    return ((x + m - 1) // m) * m


def mlp_forward(x1, x2, params, *, block_m=512, compute_dtype=jnp.float32):
    """Fused 3-layer MLP.  x1, x2: (B, in_dim) float32.

    compute_dtype: set to jnp.bfloat16 on v6e/v7x to halve activation/weight
    HBM traffic (accumulation stays f32); default f32 matches the reference
    bit-for-bit within normal fp tolerance.
    """
    w1, b1, w2, b2, w3, b3 = params
    B, in_dim = x1.shape
    assert x2.shape == (B, in_dim)
    out_dim = w3.shape[1]

    # Split W1 once in the wrapper so the kernel never concats along lanes.
    w1a = w1[:in_dim].astype(compute_dtype)
    w1b = w1[in_dim:].astype(compute_dtype)
    w2c = w2.astype(compute_dtype)

    # Lane-dense output: pad output columns up to a multiple of 128.
    out_pad = _round_up(out_dim, 128)
    w3p = jnp.pad(w3, ((0, 0), (0, out_pad - out_dim))).astype(compute_dtype)
    b3p = jnp.pad(b3, ((0, 0), (0, out_pad - out_dim)))  # biases stay f32

    # Batch tiling: large tile amortizes per-step pipeline overhead and fills
    # MXU rows; pad the batch so any B works (padded rows are sliced off).
    block_m_eff = min(block_m, _round_up(B, 8))
    Bp = _round_up(B, block_m_eff)
    if Bp != B:
        row_pad = ((0, Bp - B), (0, 0))
        x1p = jnp.pad(x1, row_pad)
        x2p = jnp.pad(x2, row_pad)
    else:
        x1p, x2p = x1, x2
    x1p = x1p.astype(compute_dtype)
    x2p = x2p.astype(compute_dtype)

    grid = (Bp // block_m_eff,)  # on v7x keep >=2 steps so both TCs are used

    x_spec = pl.BlockSpec((block_m_eff, in_dim), lambda i: (i, 0))
    # Whole-array VMEM residents: copied once, no per-step double-buffering.
    vmem_spec = pl.BlockSpec(memory_space=pltpu.MemorySpace.VMEM)

    out_padded = pl.pallas_call(
        _mlp_kernel,
        out_shape=jax.ShapeDtypeStruct((Bp, out_pad), jnp.float32),
        grid_spec=pltpu.PrefetchScalarGridSpec(
            num_scalar_prefetch=0,
            grid=grid,
            in_specs=[
                x_spec, x_spec,                    # x1, x2 (batch-tiled)
                vmem_spec, vmem_spec, vmem_spec,   # W1a, W1b, b1
                vmem_spec, vmem_spec,              # W2, b2
                vmem_spec, vmem_spec,              # W3 (padded), b3 (padded)
            ],
            out_specs=pl.BlockSpec((block_m_eff, out_pad), lambda i: (i, 0)),
        ),
        compiler_params=pltpu.CompilerParams(
            dimension_semantics=("parallel",),
            vmem_limit_bytes=32 * 1024 * 1024,
        ),
    )(x1p, x2p, w1a, w1b, b1, w2c, b2, w3p, b3p)

    return out_padded[:B, :out_dim]


def init_params(key, in_dim, out_dim):
    """Deterministic init; mirrors nn.Linear shapes (weights stored transposed)."""
    ks = jax.random.split(key, 6)

    def linear(kw, kb, fan_in, fan_out):
        bound = 1.0 / np.sqrt(fan_in)
        w = jax.random.uniform(kw, (fan_in, fan_out), jnp.float32, -bound, bound)
        b = jax.random.uniform(kb, (1, fan_out), jnp.float32, -bound, bound)
        return w, b

    w1, b1 = linear(ks[0], ks[1], in_dim * 2, 64)
    w2, b2 = linear(ks[2], ks[3], 64, 32)
    w3, b3 = linear(ks[4], ks[5], 32, out_dim)
    return (w1, b1, w2, b2, w3, b3)


def mlp_reference(x1, x2, params):
    w1, b1, w2, b2, w3, b3 = params
    x = jnp.concatenate([x1, x2], axis=1)
    h = jnp.maximum(x @ w1 + b1, 0.0)
    h = jnp.maximum(h @ w2 + b2, 0.0)
    return h @ w3 + b3


if __name__ == "__main__":
    key = jax.random.PRNGKey(0)
    k_params, k_x1, k_x2, k_y1, k_y2 = jax.random.split(key, 5)

    B, in_dim, out_dim = 8, 16, 8
    params = init_params(k_params, in_dim, out_dim)
    x1 = jax.random.normal(k_x1, (B, in_dim), jnp.float32)
    x2 = jax.random.normal(k_x2, (B, in_dim), jnp.float32)

    out = jax.block_until_ready(mlp_forward(x1, x2, params))
    ref = mlp_reference(x1, x2, params)
    np.testing.assert_allclose(np.asarray(out), np.asarray(ref),
                               rtol=1e-5, atol=1e-5)

    # Ragged batch (not a multiple of the tile) exercises the padding path.
    Br = 13
    y1 = jax.random.normal(k_y1, (Br, in_dim), jnp.float32)
    y2 = jax.random.normal(k_y2, (Br, in_dim), jnp.float32)
    out_r = jax.block_until_ready(mlp_forward(y1, y2, params))
    ref_r = mlp_reference(y1, y2, params)
    np.testing.assert_allclose(np.asarray(out_r), np.asarray(ref_r),
                               rtol=1e-5, atol=1e-5)

    print("KERNEL_OK")
</pallas_src>

<mosaic_0001>
module attributes {stable_mosaic.version = 11 : i64} {
  func.func @_mlp_kernel(%arg0: i32, %arg1: memref<8x16xf32, #tpu.memory_space<vmem>>, %arg2: memref<8x16xf32, #tpu.memory_space<vmem>>, %arg3: memref<16x64xf32, #tpu.memory_space<vmem>>, %arg4: memref<16x64xf32, #tpu.memory_space<vmem>>, %arg5: memref<1x64xf32, #tpu.memory_space<vmem>>, %arg6: memref<64x32xf32, #tpu.memory_space<vmem>>, %arg7: memref<1x32xf32, #tpu.memory_space<vmem>>, %arg8: memref<32x128xf32, #tpu.memory_space<vmem>>, %arg9: memref<1x128xf32, #tpu.memory_space<vmem>>, %arg10: memref<8x128xf32, #tpu.memory_space<vmem>>) attributes {dimension_semantics = [#tpu.dimension_semantics<parallel>], iteration_bounds = array<i64: 1>, scalar_prefetch = 0 : i64, scratch_operands = 0 : i64, tpu.core_type = #tpu.core_type<tc>, window_params = [{transform_indices = @transform_0, window_bounds = array<i64: 8, 16>}, {transform_indices = @transform_1, window_bounds = array<i64: 8, 16>}, {pipeline_mode = #tpu.pipeline_mode<synchronous>, transform_indices = @transform_2, window_bounds = array<i64: 16, 64>}, {pipeline_mode = #tpu.pipeline_mode<synchronous>, transform_indices = @transform_3, window_bounds = array<i64: 16, 64>}, {pipeline_mode = #tpu.pipeline_mode<synchronous>, transform_indices = @transform_4, window_bounds = array<i64: 1, 64>}, {pipeline_mode = #tpu.pipeline_mode<synchronous>, transform_indices = @transform_5, window_bounds = array<i64: 64, 32>}, {pipeline_mode = #tpu.pipeline_mode<synchronous>, transform_indices = @transform_6, window_bounds = array<i64: 1, 32>}, {pipeline_mode = #tpu.pipeline_mode<synchronous>, transform_indices = @transform_7, window_bounds = array<i64: 32, 128>}, {pipeline_mode = #tpu.pipeline_mode<synchronous>, transform_indices = @transform_8, window_bounds = array<i64: 1, 128>}, {transform_indices = @transform_9, window_bounds = array<i64: 8, 128>}]} {
    %c0 = arith.constant 0 : index
    %c0_0 = arith.constant 0 : index
    %0 = vector.load %arg1[%c0, %c0_0] : memref<8x16xf32, #tpu.memory_space<vmem>>, vector<8x16xf32>
    %c0_1 = arith.constant 0 : index
    %c0_2 = arith.constant 0 : index
    %1 = vector.load %arg3[%c0_1, %c0_2] : memref<16x64xf32, #tpu.memory_space<vmem>>, vector<16x64xf32>
    %cst = arith.constant dense<0.000000e+00> : vector<8x64xf32>
    %2 = tpu.matmul %0, %1, %cst {dimension_numbers = #tpu.dot_dimension_numbers<[1], [0], [0], [1], [0, 0, 1, 1], [], []>} : vector<8x16xf32>, vector<16x64xf32>, vector<8x64xf32> -> vector<8x64xf32>
    %c0_3 = arith.constant 0 : index
    %c0_4 = arith.constant 0 : index
    %3 = vector.load %arg2[%c0_3, %c0_4] : memref<8x16xf32, #tpu.memory_space<vmem>>, vector<8x16xf32>
    %c0_5 = arith.constant 0 : index
    %c0_6 = arith.constant 0 : index
    %4 = vector.load %arg4[%c0_5, %c0_6] : memref<16x64xf32, #tpu.memory_space<vmem>>, vector<16x64xf32>
    %cst_7 = arith.constant dense<0.000000e+00> : vector<8x64xf32>
    %5 = tpu.matmul %3, %4, %cst_7 {dimension_numbers = #tpu.dot_dimension_numbers<[1], [0], [0], [1], [0, 0, 1, 1], [], []>} : vector<8x16xf32>, vector<16x64xf32>, vector<8x64xf32> -> vector<8x64xf32>
    %6 = arith.addf %2, %5 : vector<8x64xf32>
    %c0_8 = arith.constant 0 : index
    %c0_9 = arith.constant 0 : index
    %7 = vector.load %arg5[%c0_8, %c0_9] : memref<1x64xf32, #tpu.memory_space<vmem>>, vector<1x64xf32>
    %8 = vector.broadcast %7 : vector<1x64xf32> to vector<8x64xf32>
    %9 = arith.addf %6, %8 : vector<8x64xf32>
    %cst_10 = arith.constant 0.000000e+00 : f32
    %10 = vector.broadcast %cst_10 : f32 to vector<8x64xf32>
    %11 = arith.maximumf %9, %10 : vector<8x64xf32>
    %c0_11 = arith.constant 0 : index
    %c0_12 = arith.constant 0 : index
    %12 = vector.load %arg6[%c0_11, %c0_12] : memref<64x32xf32, #tpu.memory_space<vmem>>, vector<64x32xf32>
    %cst_13 = arith.constant dense<0.000000e+00> : vector<8x32xf32>
    %13 = tpu.matmul %11, %12, %cst_13 {dimension_numbers = #tpu.dot_dimension_numbers<[1], [0], [0], [1], [0, 0, 1, 1], [], []>} : vector<8x64xf32>, vector<64x32xf32>, vector<8x32xf32> -> vector<8x32xf32>
    %c0_14 = arith.constant 0 : index
    %c0_15 = arith.constant 0 : index
    %14 = vector.load %arg7[%c0_14, %c0_15] : memref<1x32xf32, #tpu.memory_space<vmem>>, vector<1x32xf32>
    %15 = vector.broadcast %14 : vector<1x32xf32> to vector<8x32xf32>
    %16 = arith.addf %13, %15 : vector<8x32xf32>
    %cst_16 = arith.constant 0.000000e+00 : f32
    %17 = vector.broadcast %cst_16 : f32 to vector<8x32xf32>
    %18 = arith.maximumf %16, %17 : vector<8x32xf32>
    %c0_17 = arith.constant 0 : index
    %c0_18 = arith.constant 0 : index
    %19 = vector.load %arg8[%c0_17, %c0_18] : memref<32x128xf32, #tpu.memory_space<vmem>>, vector<32x128xf32>
    %cst_19 = arith.constant dense<0.000000e+00> : vector<8x128xf32>
    %20 = tpu.matmul %18, %19, %cst_19 {dimension_numbers = #tpu.dot_dimension_numbers<[1], [0], [0], [1], [0, 0, 1, 1], [], []>} : vector<8x32xf32>, vector<32x128xf32>, vector<8x128xf32> -> vector<8x128xf32>
    %c0_20 = arith.constant 0 : index
    %c0_21 = arith.constant 0 : index
    %21 = vector.load %arg9[%c0_20, %c0_21] : memref<1x128xf32, #tpu.memory_space<vmem>>, vector<1x128xf32>
    %22 = vector.broadcast %21 : vector<1x128xf32> to vector<8x128xf32>
    %23 = arith.addf %20, %22 : vector<8x128xf32>
    %c0_22 = arith.constant 0 : index
    %c0_23 = arith.constant 0 : index
    %24 = vector.load %arg10[%c0_22, %c0_23] : memref<8x128xf32, #tpu.memory_space<vmem>>, vector<8x128xf32>
    tpu.vector_store %arg10[%c0_22, %c0_23], %23 {strides = array<i32>} : memref<8x128xf32, #tpu.memory_space<vmem>>, vector<8x128xf32>,
    return
  }
  func.func @transform_0(%arg0: i32) -> (i32, i32) {
    %c0_i32 = arith.constant 0 : i32
    %c0_i32_0 = arith.constant 0 : i32
    return %arg0, %c0_i32 : i32, i32
  }
  func.func @transform_1(%arg0: i32) -> (i32, i32) {
    %c0_i32 = arith.constant 0 : i32
    %c0_i32_0 = arith.constant 0 : i32
    return %arg0, %c0_i32 : i32, i32
  }
  func.func @transform_2(%arg0: i32) -> (i32, i32) {
    %c0_i32 = arith.constant 0 : i32
    %c0_i32_0 = arith.constant 0 : i32
    %c0_i32_1 = arith.constant 0 : i32
    return %c0_i32, %c0_i32_0 : i32, i32
  }
  func.func @transform_3(%arg0: i32) -> (i32, i32) {
    %c0_i32 = arith.constant 0 : i32
    %c0_i32_0 = arith.constant 0 : i32
    %c0_i32_1 = arith.constant 0 : i32
    return %c0_i32, %c0_i32_0 : i32, i32
  }
  func.func @transform_4(%arg0: i32) -> (i32, i32) {
    %c0_i32 = arith.constant 0 : i32
    %c0_i32_0 = arith.constant 0 : i32
    %c0_i32_1 = arith.constant 0 : i32
    return %c0_i32, %c0_i32_0 : i32, i32
  }
  func.func @transform_5(%arg0: i32) -> (i32, i32) {
    %c0_i32 = arith.constant 0 : i32
    %c0_i32_0 = arith.constant 0 : i32
    %c0_i32_1 = arith.constant 0 : i32
    return %c0_i32, %c0_i32_0 : i32, i32
  }
  func.func @transform_6(%arg0: i32) -> (i32, i32) {
    %c0_i32 = arith.constant 0 : i32
    %c0_i32_0 = arith.constant 0 : i32
    %c0_i32_1 = arith.constant 0 : i32
    return %c0_i32, %c0_i32_0 : i32, i32
  }
  func.func @transform_7(%arg0: i32) -> (i32, i32) {
    %c0_i32 = arith.constant 0 : i32
    %c0_i32_0 = arith.constant 0 : i32
    %c0_i32_1 = arith.constant 0 : i32
    return %c0_i32, %c0_i32_0 : i32, i32
  }
  func.func @transform_8(%arg0: i32) -> (i32, i32) {
    %c0_i32 = arith.constant 0 : i32
    %c0_i32_0 = arith.constant 0 : i32
    %c0_i32_1 = arith.constant 0 : i32
    return %c0_i32, %c0_i32_0 : i32, i32
  }
  func.func @transform_9(%arg0: i32) -> (i32, i32) {
    %c0_i32 = arith.constant 0 : i32
    %c0_i32_0 = arith.constant 0 : i32
    return %arg0, %c0_i32 : i32, i32
  }
}

</mosaic_0001>

<bundles_post_ra>
// kernel: tpu_custom_call.1
= control target key start
LH: loop header
LB: loop body
LE: loop exit
PB: predicated region body
PF: predicated region fallthrough
CT: control target
= control target key end

     0   :  { %v481_v1 = vmov 0.0   ;;  %vm482_vm0 = vmmov 0   ;;  %vm39_vm1 = vcmask 130048   ;;  %s626_s0 = inlined_call_operand.vmem [shape: f32[8,16], index: 0, kind: input, shape index: {}]   ;;  %s627_s1 = inlined_call_operand.vmem [shape: f32[8,16], index: 1, kind: input, shape index: {}]   ;;  %s628_s2 = inlined_call_operand.vmem [shape: f32[16,64], index: 2, kind: input, shape index: {}]   ;;  %s629_s3 = inlined_call_operand.vmem [shape: f32[16,64], index: 3, kind: input, shape index: {}]   ;;  %s630_s4 = inlined_call_operand.vmem [shape: f32[1,64], index: 4, kind: input, shape index: {}]   ;;  %s631_s5 = inlined_call_operand.vmem [shape: f32[64,32], index: 5, kind: input, shape index: {}]   ;;  %s632_s6 = inlined_call_operand.vmem [shape: f32[1,32], index: 6, kind: input, shape index: {}]   ;;  %s633_s7 = inlined_call_operand.vmem [shape: f32[32,128], index: 7, kind: input, shape index: {}]   ;;  %s634_s8 = inlined_call_operand.vmem [shape: f32[1,128], index: 8, kind: input, shape index: {}]   ;;  %s635_s9 = inlined_call_operand.hbm [shape: f32[8,128], index: 9, kind: output, shape index: {}]  }
   0x1   :  { %v38_v0 = vld [vmem:[%s629_s3 + $0x8] sm:$0xff]  ;;  %412 = vmatprep.subr.mxu1 %v481_v1  ;;  %v37_v2 = vld [vmem:[%s629_s3] sm:$0xff]  ;;  %416 = vmatprep.mubr.msk.f32.mxu1 %vm482_vm0, %v481_v1  ;;  %v202_v4 = vld [vmem:[%s631_s5 + $0x38] sm:$0xff] }
   0x2   :  { %413 = vmatpush3.msra.mxu1 %v38_v0  ;;  %v36_v3 = vld [vmem:[%s627_s1] sm:$0xff]  ;;  %426 = vmatprep.subr.mxu0 %v481_v1 }
   0x3   :  { %14 = vsyncpa [#allocation3], 0  ;;  %414 = vmatprep.subr.mxu1 %v481_v1  ;;  %v35_v5 = vld [vmem:[%s628_s2 + $0x8] sm:$0xff]  ;;  %427 = vmatpush3.msra.mxu0 %v202_v4  ;;  %v201_v6 = vld [vmem:[%s631_s5 + $0x30] sm:$0xff]  ;;  %vm210_vm2 = vcmask 523264   ;;  %vm296_vm3 = vcmask 261120  }
   0x4   :  { %415 = vmatpush3.msra.mxu1 %v37_v2  ;;  %428 = vmatprep.subr.mxu0 %v481_v1  ;;  %v34_v7 = vld [vmem:[%s628_s2] sm:$0xff]  ;;  %v200_v9 = vld [vmem:[%s631_s5 + $0x28] sm:$0xff]  ;;  %v198_v11 = vld [vmem:[%s631_s5 + $0x18] sm:$0xff]  ;;  %s483_s22 = smov [#allocation2]  }
   0x5   :  { %417 = vmatmul.mubr.msk.f32.vlgmr.msra.gmra.mxu1 %vm39_vm1, %v36_v3  ;;  %419 = vmatprep.subr.mxu1 %v481_v1  ;;  %v33_v8 = vld [vmem:[%s626_s0] sm:$0xff]  ;;  %v197_v12 = vld [vmem:[%s631_s5 + $0x10] sm:$0xff]  ;;  %v196_v13 = vld [vmem:[%s631_s5 + $0x8] sm:$0xff]  ;;  %s377_s2 = sshll.u32 %s483_s22, 4  ;;  %s378_s2 = int_to_ptr.vmem [resolvable:$true] %s377_s2 }
   0x6   :  { %420 = vmatpush3.msra.mxu1 %v35_v5  ;;  %423 = vmatprep.mubr.msk.f32.mxu1 %vm482_vm0, %v481_v1  ;;  %v199_v10 = vld [vmem:[%s631_s5 + $0x20] sm:$0xff]  ;;  %v288_v15 = vld [vmem:[%s633_s7 + $0x18] sm:$0xff]  ;;  %v287_v24 = vld [vmem:[%s633_s7 + $0x10] sm:$0xff]  ;;  %p464_p1 = scmp.lt.s32.totalorder %s378_s2, %s378_s2 }
   0x7   :  { %421 = vmatprep.subr.mxu1 %v481_v1  ;;  %429 = vmatpush3.msra.mxu0 %v201_v6  ;;  %v195_v14 = vld [vmem:[%s631_s5] sm:$0xff]  ;;  %v286_v25 = vld [vmem:[%s633_s7 + $0x8] sm:$0xff] }
   0x8   :  { %422 = vmatpush3.msra.mxu1 %v34_v7  ;;  %430 = vmatprep.subr.mxu0 %v481_v1  ;;  %v387_v19 = vld [vmem:[%s630_s4] ss:$0 sm:$0xff] }
   0x9   :  { %424 = vmatmul.mubr.msk.f32.vlgmr.msra.gmra.mxu1 %vm39_vm1, %v33_v8  ;;  %442 = vmatprep.mubr.msk.f32.mxu0 %vm482_vm0, %v481_v1  ;;  %v285_v26 = vld [vmem:[%s633_s7] sm:$0xff]  ;;  %s459_s7 = scalar_lea.vmem %s378_s2, 128 }
   0xa   :  { %445 = vmatprep.subr.mxu1 %v481_v1  ;;  %453 = vmatprep.mubr.msk.f32.mxu1 %vm482_vm0, %v481_v1  ;;  %v388_v27 = vld [vmem:[%s632_s6] ss:$0 sm:$0xff]  ;;  %p460_p0 = scmp.ne.s32.totalorder %s378_s2, %s459_s7  ;;  %p465_p2 = scmp.lt.s32.totalorder %s459_s7, %s459_s7 }
   0xb   :  { %431 = vmatpush3.msra.mxu0 %v200_v9  ;;  %446 = vmatpush3.msra.mxu1 %v288_v15  ;;  %v390_v32 = vld [vmem:[%s634_s8] ss:$0 sm:$0xff] }
   0xc   :  { %432 = vmatprep.subr.mxu0 %v481_v1  ;;  %447 = vmatprep.subr.mxu1 %v481_v1  ;;  %p466_p3 = por %p465_p2, %p464_p1 }
   0xd   :  { %433 = vmatpush3.msra.mxu0 %v199_v10  ;;  %448 = vmatpush3.msra.mxu1 %v287_v24 }
   0xe   :  { %434 = vmatprep.subr.mxu0 %v481_v1  ;;  %449 = vmatprep.subr.mxu1 %v481_v1  ;;  %p467_p4 = pnand %p466_p3, %p460_p0 }
   0xf   :  { %435 = vmatpush3.msra.mxu0 %v198_v11  ;;  %450 = vmatpush3.msra.mxu1 %v286_v25 }
  0x10   :  { %436 = vmatprep.subr.mxu0 %v481_v1  ;;  %451 = vmatprep.subr.mxu1 %v481_v1 }
  0x11   :  { %437 = vmatpush3.msra.mxu0 %v197_v12  ;;  %452 = vmatpush3.msra.mxu1 %v285_v26 }
  0x12   :  { %438 = vmatprep.subr.mxu0 %v481_v1 }
  0x13   :  { %439 = vmatpush3.msra.mxu0 %v196_v13 }
  0x14   :  { %440 = vmatprep.subr.mxu0 %v481_v1 }
  0x15   :  { %441 = vmatpush3.msra.mxu0 %v195_v14 }
  0xc5   :  { %v109_v16 = vpop.f32.mrf.mxu1 }
  0xc7   :  { %v418_v17 = vpop.f32.mrf.mxu1 }
  0xc9   :  { %v182_v18 = vpop.f32.mrf.mxu1 }
  0xca   :  { %v183_v20 = vadd.f32 %v182_v18, %v109_v16 }
  0xcb   :  { %v425_v21 = vpop.f32.mrf.mxu1 }
  0xcc   :  { %v193_v22 = vadd.f32 %v387_v19, %v183_v20 }
  0xce   :  { %v194_v23 = vmax.f32 %v193_v22, 0.0 }
  0xd0   :  { %443 = vmatmul.mubr.msk.f32.vlgmr.msra.gmra.mxu0 %vm210_vm2, %v194_v23 }
 0x190   :  { %v280_v28 = vpop.f32.mrf.mxu0 }
 0x191   :  { %v281_v29 = vadd.f32 %v388_v27, %v280_v28 }
 0x192   :  { %v444_v30 = vpop.f32.mrf.mxu0 }
 0x193   :  { %v284_v31 = vmax.f32 %v281_v29, 0.0 }
 0x195   :  { %454 = vmatmul.mubr.msk.f32.vlgmr.msra.gmra.mxu1 %vm296_vm3, %v284_v31 }
 0x255   :  { %v366_v33 = vpop.f32.mrf.mxu1 }
 0x256   :  { %v367_v34 = vadd.f32 %v390_v32, %v366_v33 }
 0x257   :  { %v455_v35 = vpop.f32.mrf.mxu1 }
 0x258   :  { %370 = vst [vmem:[#allocation2] sm:$0xff] %v367_v34 }
 0x259   :  { %470 = shalt.err (!%p467_p4)
}
 0x25a   :  { %380 = dma.vmem_to_hbm [thread:$0]  %s378_s2, 128, %s635_s9, [#allocation3]  }
 0x25b   :  { %479 = dma.done.wait [#allocation3], 128  }
 0x25c   :  { %480 = vsyncadd [#allocation3], 4294967168 }
 0x25d   :  { %384 = vsyncpa [#allocation3], 1 }

</bundles_post_ra>
